<compile_context>
chip_gen: v5e
topology: v5e:2x2
jax: 0.10.0
libtpu: 0.0.40
codegen_flags: <defaults>
</compile_context>

<pallas_src>
import jax
import jax.numpy as jnp
from jax.experimental import pallas as pl
from jax.experimental.pallas import tpu as pltpu

NEG_SLOPE = 0.2
BN_EPS = 1e-5
KH, KW = 3, 3


def _conv_rows(xp_ref, t_ref):
    """Block-Toeplitz conv:  sum_ky  xp[ky:ky+H, :] @ T[ky]  -> (H, W*Cout) f32.

    xp_ref : (1, Hp, Wp*Cin)       lane-dense zero-padded image
    t_ref  : (KH, Wp*Cin, W*Cout)  block-Toeplitz weights (zero off the 3-tap band)
    """
    Hp = xp_ref.shape[1]
    H = Hp - (KH - 1)
    xp = xp_ref[0]                                            # (Hp, Wp*Cin)
    # TODO(synk): on v6e/v7x cast xp / T to bfloat16 for the MXU (keep the f32
    # accumulate) once the ~1e-3 relative error fits the tolerance budget.
    acc = jnp.dot(xp[0:H, :], t_ref[0], preferred_element_type=jnp.float32)
    for ky in range(1, KH):
        acc = acc + jnp.dot(xp[ky:ky + H, :], t_ref[ky],
                            preferred_element_type=jnp.float32)
    return acc                                                # (H, W*Cout) f32


def stats_kernel(xp_ref, t_ref, stats_ref):
    """Pass 1: per-image sum / sum-of-squares of the conv output (lane-dense, 128 wide).

    stats_ref : (1, 2, W*Cout)  -- row 0 = sum over H, row 1 = sum of squares over H.
    The reduction over W (lane groups) and N is done by the wrapper on tiny data.
    """
    acc = _conv_rows(xp_ref, t_ref)                           # (H, W*Cout) f32
    s = jnp.sum(acc, axis=0, keepdims=True)                   # (1, W*Cout)
    sq = jnp.sum(acc * acc, axis=0, keepdims=True)            # (1, W*Cout)
    stats_ref[0] = jnp.concatenate([s, sq], axis=0)           # (2, W*Cout)


def conv_bn_lrelu_kernel(xp_ref, t_ref, scale_ref, shift_ref, o_ref):
    """Pass 2: recompute conv, apply folded BN scale/shift + LeakyReLU, lane-dense store.

    scale_ref / shift_ref : (1, W*Cout)  per-channel affine tiled across W.
    o_ref                 : (1, H, W*Cout)
    """
    acc = _conv_rows(xp_ref, t_ref)                           # (H, W*Cout) f32
    y = acc * scale_ref[...] + shift_ref[...]
    o_ref[0] = jnp.where(y > 0, y, NEG_SLOPE * y).astype(o_ref.dtype)


def _build_toeplitz(weight, W, Wp):
    """(Cout, Cin, KH, KW) -> (KH, Wp*Cin, W*Cout) block-Toeplitz weight (tiny)."""
    Cout, Cin = weight.shape[0], weight.shape[1]
    w_t = jnp.transpose(weight, (2, 3, 1, 0))                 # (KH, KW, Cin, Cout)
    j_idx = jnp.arange(Wp)                                    # padded input column
    w_idx = jnp.arange(W)                                     # output position
    kx = j_idx[:, None] - w_idx[None, :]                      # (Wp, W) tap index
    valid = (kx >= 0) & (kx < KW)
    kx_c = jnp.clip(kx, 0, KW - 1)
    tap = w_t[:, kx_c]                                        # (KH, Wp, W, Cin, Cout)
    tap = tap * valid[None, :, :, None, None].astype(w_t.dtype)
    # [ky, j, c, w, o] -> [ky, j*Cin+c, w*Cout+o]
    return jnp.transpose(tap, (0, 1, 3, 2, 4)).reshape(KH, Wp * Cin, W * Cout)


def conv_bn_leaky_relu2d(x_nchw, weight, bias, gamma, beta):
    """x_nchw: (N, Cin, H, W) f32; weight: (Cout, Cin, 3, 3); bias/gamma/beta: (Cout,).

    `bias` is accepted for interface parity with nn.Conv2d but not applied: with
    training-mode BatchNorm it cancels exactly, so the forward output is identical.
    (If this module is ever evaluated with running stats, the bias must be re-added.)
    """
    del bias  # cancelled by the BN batch-mean subtraction
    N, Cin, H, W = x_nchw.shape
    Cout = weight.shape[0]
    Hp, Wp = H + KH - 1, W + KW - 1
    WpC = Wp * Cin
    WC = W * Cout
    M_total = N * H * W

    # NCHW -> padded lane-dense (N, Hp, Wp*Cin).
    x = jnp.transpose(x_nchw, (0, 2, 3, 1))
    xp = jnp.pad(x, ((0, 0), (1, 1), (1, 1), (0, 0))).reshape(N, Hp, WpC)

    # Block-Toeplitz conv weights (3, Wp*Cin, W*Cout) -- small, VMEM-resident.
    T = _build_toeplitz(weight, W, Wp)

    # ---- Pass 1: stats only (no conv intermediate hits HBM) ----
    stats = pl.pallas_call(
        stats_kernel,
        grid=(N,),
        in_specs=[
            pl.BlockSpec((1, Hp, WpC), lambda n: (n, 0, 0)),
            pl.BlockSpec((KH, WpC, WC), lambda n: (0, 0, 0)),
        ],
        out_specs=pl.BlockSpec((1, 2, WC), lambda n: (n, 0, 0)),
        out_shape=jax.ShapeDtypeStruct((N, 2, WC), jnp.float32),
        compiler_params=pltpu.CompilerParams(
            dimension_semantics=("parallel",)),
    )(xp, T)

    # ---- Fold global BN stats into per-channel scale / shift (tiny XLA reduction) ----
    totals = jnp.sum(stats, axis=0).reshape(2, W, Cout).sum(axis=1)   # (2, Cout)
    mean = totals[0] / M_total
    var = totals[1] / M_total - mean * mean                   # biased batch variance
    scale = gamma * jax.lax.rsqrt(var + BN_EPS)
    shift = beta - mean * scale
    scale_row = jnp.tile(scale, W).reshape(1, WC)             # lane index = w*Cout + c
    shift_row = jnp.tile(shift, W).reshape(1, WC)

    # ---- Pass 2: recompute conv + BN + LeakyReLU, lane-dense output ----
    y = pl.pallas_call(
        conv_bn_lrelu_kernel,
        grid=(N,),
        in_specs=[
            pl.BlockSpec((1, Hp, WpC), lambda n: (n, 0, 0)),
            pl.BlockSpec((KH, WpC, WC), lambda n: (0, 0, 0)),
            pl.BlockSpec((1, WC), lambda n: (0, 0)),
            pl.BlockSpec((1, WC), lambda n: (0, 0)),
        ],
        out_specs=pl.BlockSpec((1, H, WC), lambda n: (n, 0, 0)),
        out_shape=jax.ShapeDtypeStruct((N, H, WC), x_nchw.dtype),
        compiler_params=pltpu.CompilerParams(
            dimension_semantics=("parallel",)),
    )(xp, T, scale_row, shift_row)

    # (N, H, W*Cout) -> (N, H, W, Cout) -> NCHW
    return jnp.transpose(y.reshape(N, H, W, Cout), (0, 3, 1, 2))


def reference(x_nchw, weight, bias, gamma, beta):
    y = jax.lax.conv_general_dilated(
        x_nchw, weight, window_strides=(1, 1), padding=((1, 1), (1, 1)),
        dimension_numbers=("NCHW", "OIHW", "NCHW"))
    y = y + bias[None, :, None, None]
    mean = jnp.mean(y, axis=(0, 2, 3), keepdims=True)
    var = jnp.mean((y - mean) ** 2, axis=(0, 2, 3), keepdims=True)
    y = (y - mean) * jax.lax.rsqrt(var + BN_EPS)
    y = y * gamma[None, :, None, None] + beta[None, :, None, None]
    return jnp.where(y > 0, y, NEG_SLOPE * y)


if __name__ == "__main__":
    N, Cin, Cout, H, W = 2, 4, 8, 16, 16

    key = jax.random.PRNGKey(0)
    kx, kw, kb, kg, kbt = jax.random.split(key, 5)
    x = jax.random.normal(kx, (N, Cin, H, W), dtype=jnp.float32)
    # Deterministic synthetic parameters (shapes per nn.Conv2d / nn.BatchNorm2d).
    weight = 0.1 * jax.random.normal(kw, (Cout, Cin, 3, 3), dtype=jnp.float32)
    bias = 0.1 * jax.random.normal(kb, (Cout,), dtype=jnp.float32)
    gamma = 1.0 + 0.1 * jax.random.normal(kg, (Cout,), dtype=jnp.float32)
    beta = 0.1 * jax.random.normal(kbt, (Cout,), dtype=jnp.float32)

    out = conv_bn_leaky_relu2d(x, weight, bias, gamma, beta)
    out = jax.block_until_ready(out)

    ref = jax.block_until_ready(reference(x, weight, bias, gamma, beta))
    assert out.shape == (N, Cout, H, W)
    assert jnp.allclose(out, ref, atol=1e-4, rtol=1e-4), \
        f"max abs err = {jnp.max(jnp.abs(out - ref))}"

    print("KERNEL_OK")
</pallas_src>

<mosaic_0001>
module attributes {stable_mosaic.version = 11 : i64} {
  func.func @stats_kernel(%arg0: i32, %arg1: memref<1x18x72xf32, #tpu.memory_space<vmem>>, %arg2: memref<3x72x128xf32, #tpu.memory_space<vmem>>, %arg3: memref<1x2x128xf32, #tpu.memory_space<vmem>>) attributes {dimension_semantics = [#tpu.dimension_semantics<parallel>], iteration_bounds = array<i64: 2>, scalar_prefetch = 0 : i64, scratch_operands = 0 : i64, tpu.core_type = #tpu.core_type<tc>, window_params = [{transform_indices = @transform_0, window_bounds = array<i64: 1, 18, 72>}, {pipeline_mode = #tpu.pipeline_mode<synchronous>, transform_indices = @transform_1, window_bounds = array<i64: 3, 72, 128>}, {transform_indices = @transform_2, window_bounds = array<i64: 1, 2, 128>}]} {
    %c0 = arith.constant 0 : index
    %c0_0 = arith.constant 0 : index
    %c0_1 = arith.constant 0 : index
    %0 = vector.load %arg1[%c0, %c0_0, %c0_1] : memref<1x18x72xf32, #tpu.memory_space<vmem>>, vector<1x18x72xf32>
    %1 = vector.shape_cast %0 : vector<1x18x72xf32> to vector<18x72xf32>
    %2 = vector.extract_strided_slice %1 {offsets = [0, 0], sizes = [16, 72], strides = [1, 1]} : vector<18x72xf32> to vector<16x72xf32>
    %c0_2 = arith.constant 0 : index
    %c0_3 = arith.constant 0 : index
    %c0_4 = arith.constant 0 : index
    %3 = vector.load %arg2[%c0_2, %c0_3, %c0_4] : memref<3x72x128xf32, #tpu.memory_space<vmem>>, vector<1x72x128xf32>
    %4 = vector.shape_cast %3 : vector<1x72x128xf32> to vector<72x128xf32>
    %cst = arith.constant dense<0.000000e+00> : vector<16x128xf32>
    %5 = tpu.matmul %2, %4, %cst {dimension_numbers = #tpu.dot_dimension_numbers<[1], [0], [0], [1], [0, 0, 1, 1], [], []>} : vector<16x72xf32>, vector<72x128xf32>, vector<16x128xf32> -> vector<16x128xf32>
    %6 = vector.extract_strided_slice %1 {offsets = [1, 0], sizes = [16, 72], strides = [1, 1]} : vector<18x72xf32> to vector<16x72xf32>
    %c1 = arith.constant 1 : index
    %c0_5 = arith.constant 0 : index
    %c0_6 = arith.constant 0 : index
    %7 = vector.load %arg2[%c1, %c0_5, %c0_6] : memref<3x72x128xf32, #tpu.memory_space<vmem>>, vector<1x72x128xf32>
    %8 = vector.shape_cast %7 : vector<1x72x128xf32> to vector<72x128xf32>
    %cst_7 = arith.constant dense<0.000000e+00> : vector<16x128xf32>
    %9 = tpu.matmul %6, %8, %cst_7 {dimension_numbers = #tpu.dot_dimension_numbers<[1], [0], [0], [1], [0, 0, 1, 1], [], []>} : vector<16x72xf32>, vector<72x128xf32>, vector<16x128xf32> -> vector<16x128xf32>
    %10 = arith.addf %5, %9 : vector<16x128xf32>
    %11 = vector.extract_strided_slice %1 {offsets = [2, 0], sizes = [16, 72], strides = [1, 1]} : vector<18x72xf32> to vector<16x72xf32>
    %c2 = arith.constant 2 : index
    %c0_8 = arith.constant 0 : index
    %c0_9 = arith.constant 0 : index
    %12 = vector.load %arg2[%c2, %c0_8, %c0_9] : memref<3x72x128xf32, #tpu.memory_space<vmem>>, vector<1x72x128xf32>
    %13 = vector.shape_cast %12 : vector<1x72x128xf32> to vector<72x128xf32>
    %cst_10 = arith.constant dense<0.000000e+00> : vector<16x128xf32>
    %14 = tpu.matmul %11, %13, %cst_10 {dimension_numbers = #tpu.dot_dimension_numbers<[1], [0], [0], [1], [0, 0, 1, 1], [], []>} : vector<16x72xf32>, vector<72x128xf32>, vector<16x128xf32> -> vector<16x128xf32>
    %15 = arith.addf %10, %14 : vector<16x128xf32>
    %cst_11 = arith.constant dense<0.000000e+00> : vector<128xf32>
    %16 = vector.multi_reduction <add>, %15, %cst_11 [0] : vector<16x128xf32> to vector<128xf32>
    %17 = vector.shape_cast %16 : vector<128xf32> to vector<1x128xf32>
    %18 = arith.mulf %15, %15 : vector<16x128xf32>
    %cst_12 = arith.constant dense<0.000000e+00> : vector<128xf32>
    %19 = vector.multi_reduction <add>, %18, %cst_12 [0] : vector<16x128xf32> to vector<128xf32>
    %20 = vector.shape_cast %19 : vector<128xf32> to vector<1x128xf32>
    %21 = tpu.concatenate %17, %20 in 0 : vector<1x128xf32>, vector<1x128xf32> -> vector<2x128xf32>
    %c0_13 = arith.constant 0 : index
    %c0_14 = arith.constant 0 : index
    %c0_15 = arith.constant 0 : index
    %22 = vector.load %arg3[%c0_13, %c0_14, %c0_15] : memref<1x2x128xf32, #tpu.memory_space<vmem>>, vector<1x2x128xf32>
    %23 = vector.shape_cast %22 : vector<1x2x128xf32> to vector<2x128xf32>
    %24 = vector.shape_cast %21 : vector<2x128xf32> to vector<1x2x128xf32>
    tpu.vector_store %arg3[%c0_13, %c0_14, %c0_15], %24 {strides = array<i32>} : memref<1x2x128xf32, #tpu.memory_space<vmem>>, vector<1x2x128xf32>,
    return
  }
  func.func @transform_0(%arg0: i32) -> (i32, i32, i32) {
    %c0_i32 = arith.constant 0 : i32
    %c0_i32_0 = arith.constant 0 : i32
    %c0_i32_1 = arith.constant 0 : i32
    return %arg0, %c0_i32, %c0_i32_0 : i32, i32, i32
  }
  func.func @transform_1(%arg0: i32) -> (i32, i32, i32) {
    %c0_i32 = arith.constant 0 : i32
    %c0_i32_0 = arith.constant 0 : i32
    %c0_i32_1 = arith.constant 0 : i32
    %c0_i32_2 = arith.constant 0 : i32
    return %c0_i32, %c0_i32_0, %c0_i32_1 : i32, i32, i32
  }
  func.func @transform_2(%arg0: i32) -> (i32, i32, i32) {
    %c0_i32 = arith.constant 0 : i32
    %c0_i32_0 = arith.constant 0 : i32
    %c0_i32_1 = arith.constant 0 : i32
    return %arg0, %c0_i32, %c0_i32_0 : i32, i32, i32
  }
}

</mosaic_0001>

<bundles_post_ra>
// kernel: tpu_custom_call.1
= control target key start
LH: loop header
LB: loop body
LE: loop exit
PB: predicated region body
PF: predicated region fallthrough
CT: control target
= control target key end

     0   :  { %7 = vsyncpa [#allocation3], 0  ;;  %s697_s0 = inlined_call_operand.vmem [shape: f32[2,18,72], index: 0, kind: input, shape index: {}]   ;;  %s698_s1 = inlined_call_operand.hbm [shape: f32[3,72,128], index: 1, kind: input, shape index: {}]   ;;  %s699_s2 = inlined_call_operand.hbm [shape: f32[2,2,128], index: 2, kind: output, shape index: {}]  }
   0x1   :  { %8 = vsyncpa [#allocation4], 0 }
   0x2   :  { %10 = vsyncpa [#allocation4 + $0x1], 0  ;;  %s592_s9 = smov 0   ;;  %s594_s10 = smov 0  }
   0x3   :  { %s596_s11 = smov 0   ;;  %s598_s12 = smov 0  }
   0x4 LB: > { %s613_s13 = sadd.s32 4294967295, %s572_s12   ;;  %s396_s14 = sadd.s32 4294967294, %s572_s12   ;;  %s572_s12 = sphi %s598_s12, %s705_s12   ;;  %s568_s11 = sphi %s596_s11, %s704_s11   ;;  %s564_s10 = sphi %s594_s10, %s703_s10   ;;  %s560_s9 = sphi %s592_s9, %s702_s9  }
   0x5   : > { %s617_s15 = sadd.s32 1, %s572_s12   ;;  %s70_s16 = sadd.s32 1, %s568_s11 }
   0x6   : > { %s67_s17 = ssub.s32 %s572_s12, %s617_s15  ;;  %p80_p0 = scmp.ne.s32.totalorder %s568_s11, %s564_s10 }
   0x7   : > { %p68_p1 = scmp.eq.s32.totalorder %s67_s17, 0  ;;  %p81_p2 = scmp.eq.s32.totalorder %s613_s13, 1 }
   0x8   : > { %p86_p3 = scmp.ne.s32.totalorder %s564_s10, %s560_s9  ;;  %p87_p4 = scmp.eq.s32.totalorder %s396_s14, 1 }
   0x9   : > { %s628_s18 = scalar_select %p68_p1, %s568_s11, %s70_s16  }
   0xa   : > { %p630_p5 = por %p81_p2, %p80_p0  ;;  %p634_p6 = por %p87_p4, %p86_p3 }
   0xb   : > { %p397_p7 = scmp.ge.s32.totalorder %s572_s12, 1  ;;  %p94_p8 = scmp.lt.s32.totalorder %s572_s12, 3 }
   0xc   : > { %p438_p9 = scmp.eq.s32.totalorder %s613_s13, 0  ;;  %s105_s23 = sshll.u32 %s698_s1, 4  ;;  %s106_s23 = int_to_ptr.hbm [resolvable:$true] %s105_s23 }
   0xd   : > { %p95_p10 = pnand %p397_p7, %p94_p8  ;;  %s574_s24 = smov [#allocation2]  }
   0xe   : > { %s107_s25 = sshll.u32 %s574_s24, 4  ;;  %s575_s26 = smov 128   ;;  %s108_s25 = int_to_ptr.vmem [resolvable:$true] %s107_s25 }
   0xf   : > { %p430_p11 = pneg %p95_p10  ;;  %s576_s27 = smov 8  }
  0x10   : > { %131 = sbr.rel (%p95_p10) target bundleno = 202 (0xca), region = 28 }
  0x11   : > { %p431_p12 = pnand %p438_p9, %p430_p11 }
  0x13   : > { %433 = dma.hbm_to_vmem [thread:$0]  (!%p431_p12), %s106_s23, 3456, %s108_s25, [#allocation3], %s575_s26, %s575_s26, %s576_s27  }
  0x15   : > { %551 = dma.done.wait (%p438_p9), [#allocation3], 3456  }
  0x16   : > { %553 = vsyncadd (%p438_p9), [#allocation3], 4294963840  ;;  %p154_p13 = scmp.lt.s32.totalorder %s613_s13, 1  ;;  %v254_v0 = vld [vmem:[#allocation2 + $0xd0] sm:$0xff]  ;;  %v253_v1 = vld [vmem:[#allocation2 + $0xc8] sm:$0xff]  ;;  %vm255_vm0 = vcmask 1045504  }
  0x17   : > { %v180_v2 = vld [vmem:[#allocation2 + $0x88] sm:$0xff]  ;;  %272 = vmatpush.msra.mxu2 %v254_v0  ;;  %v170_v3 = vld [vmem:[#allocation2 + $0x40] sm:$0xff]  ;;  %v169_v6 = vld [vmem:[#allocation2 + $0x38] sm:$0xff]  ;;  %vm184_vm1 = vcmask 1046528   ;;  %vm190_vm2 = vcmask 588800   ;;  %s151_s5 = sand.u32 1, %s564_s10  }
  0x18   : > { %s155_s28 = scalar_select %p154_p13, %s613_s13, 1  ;;  %202 = vmatpush.msra.mxu0 %v180_v2  ;;  %v179_v4 = vld [vmem:[#allocation2 + $0x80] sm:$0xff]  ;;  %229 = vmatpush.msra.mxu1 %v170_v3  ;;  %v178_v7 = vld [vmem:[#allocation2 + $0x78] sm:$0xff]  ;;  %v168_v8 = vld [vmem:[#allocation2 + $0x30] sm:$0xff]  ;;  %vm306_vm3 = vcmask 1040384  }
  0x19   : > { %v252_v5 = vld [vmem:[#allocation2 + $0xc0] sm:$0xff]  ;;  %414 = vmatpush.msra.mxu3 %v180_v2  ;;  %273 = vmatpush.msra.mxu2 %v253_v1  ;;  %v251_v9 = vld [vmem:[#allocation2 + $0xb8] sm:$0xff]  ;;  %v177_v10 = vld [vmem:[#allocation2 + $0x70] sm:$0xff]  ;;  %s402_s6 = sshll.u32 %s151_s5, 1  ;;  %s411_s7 = sshll.u32 %s613_s13, 1 }
  0x1a   : > { %s423_s29 = smul.u32 24, %s155_s28  ;;  %203 = vmatpush.msra.mxu0 %v179_v4  ;;  %230 = vmatpush.msra.mxu1 %v169_v6  ;;  %v167_v11 = vld [vmem:[#allocation2 + $0x28] sm:$0xff]  ;;  %v250_v12 = vld [vmem:[#allocation2 + $0xb0] sm:$0xff]  ;;  %v166_v15 = vld [vmem:[#allocation2 + $0x20] sm:$0xff]  ;;  %s320_s16 = scalar_lea.hbm %s699_s2, %s411_s7 }
  0x1b   : > { %415 = vmatpush.msra.mxu3 %v179_v4  ;;  %274 = vmatpush.msra.mxu2 %v252_v5  ;;  %v176_v13 = vld [vmem:[#allocation2 + $0x68] sm:$0xff]  ;;  %v175_v16 = vld [vmem:[#allocation2 + $0x60] sm:$0xff]  ;;  %v165_v19 = vld [vmem:[#allocation2 + $0x18] sm:$0xff]  ;;  %s153_s17 = scalar_lea.vmem [#allocation5], %s402_s6  ;;  %s324_s22 = sshll.u32 %s320_s16, 4  ;;  %s325_s22 = int_to_ptr.hbm [resolvable:$true] %s324_s22 }
  0x1c   : > { %204 = vmatpush.msra.mxu0 %v178_v7  ;;  %s158_s4 = scalar_lea.vmem %s697_s0, %s423_s29  ;;  %231 = vmatpush.msra.mxu1 %v168_v8  ;;  %v249_v14 = vld [vmem:[#allocation2 + $0xa8] sm:$0xff]  ;;  %v248_v20 = vld [vmem:[#allocation2 + $0xa0] sm:$0xff]  ;;  %v174_v21 = vld [vmem:[#allocation2 + $0x58] sm:$0xff]  ;;  %s322_s21 = sshll.u32 %s153_s17, 4  ;;  %s323_s21 = int_to_ptr.vmem [resolvable:$true] %s322_s21 }
  0x1d   : > { %416 = vmatpush.msra.mxu3 %v178_v7  ;;  %275 = vmatpush.msra.mxu2 %v251_v9  ;;  %v159_v17 = vld [vmem:[%s158_s4] sm:$0xff]  ;;  %v160_v18 = vld [vmem:[%s158_s4 + $0x8] sm:$0xff]  ;;  %v164_v22 = vld [vmem:[#allocation2 + $0x10] sm:$0xff]  ;;  %s310_s13 = scalar_lea.sflag [#allocation4], %s151_s5  ;;  %s520_s23 = sshra.s32 %s325_s22, 4  ;;  %s521_s23 = int_to_ptr.hbm [resolvable:$true] %s520_s23 }
  0x1e   : > { %205 = vmatpush.msra.mxu0 %v177_v10  ;;  %232 = vmatpush.msra.mxu1 %v167_v11  ;;  %v256_v23 = vrot.slane %v159_v17, 2  ;;  %v257_v24 = vrot.slane %v160_v18, 2  ;;  %v161_v25 = vld [vmem:[%s158_s4 + $0x10] sm:$0x3]  ;;  %v247_v26 = vld [vmem:[#allocation2 + $0x98] sm:$0xff]  ;;  %v185_v28 = vrot.slane %v159_v17, 1  ;;  %p527_p3 = scmp.lt.s32.totalorder %s521_s23, %s699_s2 }
  0x1f   : > { %417 = vmatpush.msra.mxu3 %v177_v10  ;;  %276 = vmatpush.msra.mxu2 %v250_v12  ;;  %v173_v27 = vld [vmem:[#allocation2 + $0x50] sm:$0xff]  ;;  %v186_v29 = vrot.slane %v160_v18, 1  ;;  %v163_v30 = vld [vmem:[#allocation2 + $0x8] sm:$0xff]  ;;  %v188_v33 = vrot.slane %v161_v25, 1  ;;  %v162_v35 = vld [vmem:[#allocation2] sm:$0xff]  ;;  %v259_v38 = vrot.slane %v161_v25, 2 }
  0x20   : > { %206 = vmatpush.msra.mxu0 %v176_v13  ;;  %233 = vmatpush.msra.mxu1 %v166_v15  ;;  %v246_v31 = vld [vmem:[#allocation2 + $0x90] sm:$0xff]  ;;  %v172_v32 = vld [vmem:[#allocation2 + $0x48] sm:$0xff]  ;;  %v258_v34 = vsel %vm255_vm0, %v256_v23, %v257_v24  ;;  %s522_s24 = scalar_lea.hbm %s521_s23, 2  ;;  %s526_s27 = scalar_lea.hbm %s699_s2, 4 }
  0x21   : > { %418 = vmatpush.msra.mxu3 %v176_v13  ;;  %277 = vmatpush.msra.mxu2 %v249_v14  ;;  %v187_v36 = vsel %vm184_vm1, %v185_v28, %v186_v29  ;;  %v189_v37 = vsel %vm184_vm1, %v186_v29, %v188_v33  ;;  %v260_v39 = vsel %vm255_vm0, %v257_v24, %v259_v38  ;;  %p523_p0 = scmp.ne.s32.totalorder %s521_s23, %s522_s24  ;;  %p528_p4 = scmp.lt.s32.totalorder %s526_s27, %s522_s24 }
  0x22   : > { %207 = vmatpush.msra.mxu0 %v175_v16  ;;  %234 = vmatpush.msra.mxu1 %v165_v19 }
  0x23   : > { %419 = vmatpush.msra.mxu3 %v175_v16  ;;  %278 = vmatpush.msra.mxu2 %v248_v20  ;;  %p524_p1 = pnand %p523_p0, %p630_p5  ;;  %p529_p7 = por %p528_p4, %p527_p3 }
  0x24   : > { %208 = vmatpush.msra.mxu0 %v174_v21  ;;  %235 = vmatpush.msra.mxu1 %v164_v22 }
  0x25   : > { %420 = vmatpush.msra.mxu3 %v174_v21  ;;  %279 = vmatpush.msra.mxu2 %v247_v26  ;;  %p525_p2 = pneg %p524_p1 }
  0x26   : > { %209 = vmatpush.msra.mxu0 %v173_v27  ;;  %236 = vmatpush.msra.mxu1 %v163_v30 }
  0x27   : > { %421 = vmatpush.msra.mxu3 %v173_v27  ;;  %280 = vmatpush.msra.mxu2 %v246_v31  ;;  %p530_p8 = pnand %p529_p7, %p525_p2 }
  0x28   : > { %210 = vmatpush.msra.mxu0 %v172_v32  ;;  %408 = vmatmul.msk.f32.vlgmr.msra.gmra.mxu2 %vm190_vm2, %v258_v34 }
  0x29   : > { %237 = vmatpush.msra.mxu1 %v162_v35  ;;  %404 = vmatmul.msk.f32.vlgmr.msra.gmra.mxu0 %vm190_vm2, %v187_v36 }
  0x2a   : > { %406 = vmatmul.msk.f32.vlgmr.msra.gmra.mxu1 %vm190_vm2, %v159_v17  ;;  %422 = vmatpush.msra.mxu3 %v172_v32 }
  0x2b   : > { %405 = vmatmul.msk.f32.vlgmr.msra.gmra.mxu3 %vm190_vm2, %v189_v37 }
  0x30   : > { %409 = vmatmul.msk.f32.gmra.mxu2 %vm190_vm2, %v260_v39 }
  0x32   : > { %407 = vmatmul.msk.f32.gmra.mxu1 %vm190_vm2, %v160_v18 }
  0xa6   : > { %v212_v41 = vpop.f32.mrf.mxu0 }
  0xa7   : > { %v239_v40 = vpop.f32.mrf.mxu1 }
  0xa8   : > { %v240_v43 = vadd.f32 %v239_v40, %v212_v41 }
  0xab   : > { %v282_v42 = vpop.f32.mrf.mxu2 }
  0xac   : > { %v288_v47 = vadd.f32 %v282_v42, %v240_v43 }
  0xae   : > { %v215_v44 = vpop.f32.mrf.mxu3  ;;  %v297_v50 = vmul.f32 %v288_v47, %v288_v47 }
  0xaf   : > { %v242_v45 = vpop.f32.mrf.mxu1 }
  0xb0   : > { %v243_v46 = vadd.f32 %v242_v45, %v215_v44 }
  0xb3   : > { %v285_v48 = vpop.f32.mrf.mxu2 }
  0xb4   : > { %v289_v49 = vadd.f32 %v285_v48, %v243_v46 }
  0xb6   : > { %v290_v51 = vadd.f32 %v289_v49, %v288_v47  ;;  %v298_v52 = vmul.f32 %v289_v49, %v289_v49 }
  0xb8   : > { %v291_v53 = vrot.slane %v290_v51, 4  ;;  %v299_v54 = vadd.f32 %v298_v52, %v297_v50 }
  0xba   : > { %v292_v55 = vadd.f32 %v291_v53, %v290_v51  ;;  %v300_v56 = vrot.slane %v299_v54, 4 }
  0xbc   : > { %v293_v57 = vrot.slane %v292_v55, 2  ;;  %v301_v58 = vadd.f32 %v300_v56, %v299_v54 }
  0xbe   : > { %v294_v59 = vadd.f32 %v293_v57, %v292_v55  ;;  %v302_v60 = vrot.slane %v301_v58, 2 }
  0xc0   : > { %v295_v61 = vrot.slane %v294_v59, 1  ;;  %v303_v62 = vadd.f32 %v302_v60, %v301_v58 }
  0xc2   : > { %v304_v63 = vrot.slane %v303_v62, 1  ;;  %v296_v0 = vadd.f32 %v295_v61, %v294_v59 }
  0xc4   : > { %v305_v1 = vadd.f32 %v304_v63, %v303_v62 }
  0xc6   : > { %v307_v2 = vsel %vm306_vm3, %v296_v0, %v305_v1 }
  0xc7   : > { %308 = vst [vmem:[%s153_s17] sm:$0x3] %v307_v2 }
  0xc8   : > { %533 = shalt.err (!%p530_p8)
}
  0xc9   : > { %428 = dma.vmem_to_hbm [thread:$0]  (%p630_p5), %s323_s21, 32, %s325_s22, %s310_s13  }
  0xca PF: > { %p440_p9 = scmp.ge.s32.totalorder %s572_s12, 2  ;;  %s336_s30 = sand.u32 1, %s560_s9  }
  0xcb   : > { %s337_s3 = scalar_lea.sflag [#allocation4], %s336_s30 }
  0xcc   : > { %p435_p10 = pnand %p440_p9, %p634_p6 }
  0xce   : > { %p436_p11 = pneg %p435_p10 }
  0xd0   : > { %555 = dma.done.wait (%p436_p11), %s337_s3, 32  }
  0xd1   : > { %557 = vsyncadd (%p436_p11), %s337_s3, 4294967264  ;;  %p13_p12 = scmp.ge.s32.totalorder %s617_s15, 4   ;;  %s702_s9 = smov %s564_s10 }
  0xd2   : > { %s703_s10 = smov %s568_s11  ;;  %s704_s11 = smov %s628_s18 }
  0xd3   : > { %s705_s12 = smov %s617_s15  ;;  %15 = sbr.rel (!%p13_p12) target bundleno = 4 (0x4), region = 70 }
  0xd8   :  { %343 = vsyncpa [#allocation3], 1 }
  0xd9   :  { %345 = vsyncpa [#allocation3 + $0x1], 1 }
  0xda   :  { %346 = vsyncpa [#allocation4], 1 }
  0xdb   :  { %348 = vsyncpa [#allocation4 + $0x1], 1 }

</bundles_post_ra>
